<compile_context>
chip_gen: v6e
topology: v6e:2x2x1
jax: 0.10.0
libtpu: 0.0.40
codegen_flags: <defaults>
</compile_context>

<pallas_src>
import functools

import jax
import jax.numpy as jnp
from jax.experimental import pallas as pl
from jax.experimental.pallas import tpu as pltpu

_ALPHA = 0.25
_GAMMA = 2.0  # statically 2 -> implemented as d*d in the kernel
_EPS = 1e-9

_SUBLANES = 8
_LANES = 128
_MAX_BLOCK_ROWS = 8192  # (8192,128) f32 block = 4 MiB; 2 inputs x 2 bufs = 16 MiB VMEM


def _round_up(v, m):
    return (v + m - 1) // m * m


def _focal_loss_kernel(x_ref, y_ref, loss_out_ref, pos_out_ref, *,
                       block_rows, n_valid, needs_mask, binary_targets):
    i = pl.program_id(0)

    x = x_ref[...].astype(jnp.float32)
    y = y_ref[...].astype(jnp.float32)

    p = jax.nn.sigmoid(x)
    d = p - y                                      # gamma == 2  ->  d * d (VPU)

    if binary_targets:
        # Binary-target fast path: 1 log per element instead of 2, and the
        # alpha blend collapses to a select.  Exact vs. the reference when
        # y is strictly in {0, 1}.
        is_pos = y > 0.5
        alpha_t = jnp.where(is_pos, _ALPHA, 1.0 - _ALPHA)
        q = jnp.where(is_pos, p, 1.0 - p)          # prob of the true class
        loss = (d * d) * alpha_t * (0.0 - jnp.log(q + _EPS))
    else:
        # General (soft-target) path: matches the PyTorch module for any y.
        alpha_t = _ALPHA * y + (1.0 - _ALPHA) * (1.0 - y)
        bce = (y * (0.0 - jnp.log(p + _EPS))
               + (1.0 - y) * (0.0 - jnp.log(1.0 - p + _EPS)))
        loss = (d * d) * alpha_t * bce

    groups = block_rows // _SUBLANES

    def _write(loss_v, pos_v):
        # Per-block partial sums: reduce only along the leading (vreg-group)
        # axis (plain VPU adds).  Final cross-lane reduction happens outside.
        loss_out_ref[...] = loss_v.reshape(groups, _SUBLANES, _LANES).sum(axis=0)
        pos_out_ref[...] = pos_v.reshape(groups, _SUBLANES, _LANES).sum(axis=0)

    if needs_mask:
        # Only the LAST block can contain out-of-range (tail / pad) elements;
        # restrict the iota/compare/select cost to that single step.
        is_last = i == pl.num_programs(0) - 1

        @pl.when(jnp.logical_not(is_last))
        def _():
            _write(loss, y)

        @pl.when(is_last)
        def _():
            remaining = n_valid - i * (block_rows * _LANES)   # scalar subtract
            row = jax.lax.broadcasted_iota(jnp.int32, (block_rows, _LANES), 0)
            lane = jax.lax.broadcasted_iota(jnp.int32, (block_rows, _LANES), 1)
            valid = (row * _LANES + lane) < remaining
            # Mask BEFORE the reduction: garbage (possibly NaN/Inf) in block
            # padding cannot leak through the select.
            _write(jnp.where(valid, loss, 0.0), jnp.where(valid, y, 0.0))
    else:
        _write(loss, y)


def focal_loss(keypoint_pred, keypoint_truth, reduction="mean",
               binary_targets=False):
    """Pallas TPU implementation of FocalLoss.forward (NCHW inputs).

    Set binary_targets=True only if keypoint_truth is strictly {0, 1}; the
    default (False) keeps the exact soft-target semantics of the PyTorch module.
    """
    x = keypoint_pred.reshape(-1)
    y = keypoint_truth.reshape(-1)
    n = x.shape[0]

    # Lane alignment: only pad in the (rare) case the flat size is not a
    # multiple of 128; padded elements are masked out in-kernel anyway.
    n_lane = _round_up(n, _LANES)
    if n_lane != n:
        x = jnp.pad(x, (0, n_lane - n))
        y = jnp.pad(y, (0, n_lane - n))
    rows = n_lane // _LANES

    # Aim for >= 2 grid steps (both v7x TensorCores get work) while keeping
    # each block's double-buffered inputs well within VMEM.
    block_rows = min(_MAX_BLOCK_ROWS,
                     max(_SUBLANES, _round_up(pl.cdiv(rows, 2), _SUBLANES)))
    num_blocks = pl.cdiv(rows, block_rows)
    needs_mask = (num_blocks * block_rows * _LANES) != n

    x2 = x.reshape(rows, _LANES)
    y2 = y.reshape(rows, _LANES)

    kernel = functools.partial(
        _focal_loss_kernel,
        block_rows=block_rows,
        n_valid=n,
        needs_mask=needs_mask,
        binary_targets=binary_targets,
    )

    # 2 inputs x 2 pipeline buffers of (block_rows, 128) f32 + tiny partial-sum
    # outputs + headroom.  Sized per call so large blocks also compile on v5e
    # (16 MiB scoped-VMEM default) and stay under v7x's 64 MiB physical VMEM.
    vmem_limit = 2 * 2 * block_rows * _LANES * 4 + (4 << 20)

    loss_part, pos_part = pl.pallas_call(
        kernel,
        out_shape=(
            jax.ShapeDtypeStruct((num_blocks * _SUBLANES, _LANES), jnp.float32),
            jax.ShapeDtypeStruct((num_blocks * _SUBLANES, _LANES), jnp.float32),
        ),
        grid_spec=pltpu.PrefetchScalarGridSpec(
            num_scalar_prefetch=0,
            grid=(num_blocks,),
            in_specs=[
                pl.BlockSpec((block_rows, _LANES), lambda i: (i, 0)),
                pl.BlockSpec((block_rows, _LANES), lambda i: (i, 0)),
            ],
            out_specs=[
                pl.BlockSpec((_SUBLANES, _LANES), lambda i: (i, 0)),
                pl.BlockSpec((_SUBLANES, _LANES), lambda i: (i, 0)),
            ],
        ),
        compiler_params=pltpu.CompilerParams(
            dimension_semantics=("parallel",),
            vmem_limit_bytes=vmem_limit,
        ),
    )(x2, y2)

    # Single small epilogue reduction (fused when this wrapper is jitted).
    loss_sum = loss_part.sum()
    num_pos = pos_part.sum()
    if reduction == "mean":
        return loss_sum / jnp.maximum(num_pos, 1.0)
    return loss_sum


def _focal_loss_ref(x, y, reduction="mean"):
    x = x.astype(jnp.float32)
    y = y.astype(jnp.float32)
    p = jax.nn.sigmoid(x)
    weight = (p - y) ** _GAMMA * (_ALPHA * y + (1.0 - _ALPHA) * (1.0 - y))
    loss = y * (-jnp.log(p + _EPS)) + (1.0 - y) * (-jnp.log(1.0 - p + _EPS))
    loss = (loss * weight).sum()
    if reduction == "mean":
        loss = loss / jnp.maximum(y.sum(), 1.0)
    return loss


if __name__ == "__main__":
    key = jax.random.PRNGKey(0)
    k1, k2 = jax.random.split(key)

    # NCHW inputs: keypoint heatmap logits + binary keypoint targets
    B, C, H, W = 2, 4, 16, 16
    keypoint_pred = jax.random.normal(k1, (B, C, H, W), dtype=jnp.float32)
    keypoint_truth = (
        jax.random.uniform(k2, (B, C, H, W), dtype=jnp.float32) > 0.9
    ).astype(jnp.float32)

    ref = _focal_loss_ref(keypoint_pred, keypoint_truth, reduction="mean")

    # Fast path (single log per element) — valid here because targets are 0/1.
    loss_fast = jax.jit(
        functools.partial(focal_loss, reduction="mean", binary_targets=True)
    )(keypoint_pred, keypoint_truth)
    loss_fast = jax.block_until_ready(loss_fast)
    assert jnp.allclose(loss_fast, ref, rtol=1e-5, atol=1e-6), (loss_fast, ref)

    # General (soft-target) path — exact semantics of the PyTorch module.
    loss_gen = jax.jit(
        functools.partial(focal_loss, reduction="mean", binary_targets=False)
    )(keypoint_pred, keypoint_truth)
    loss_gen = jax.block_until_ready(loss_gen)
    assert jnp.allclose(loss_gen, ref, rtol=1e-5, atol=1e-6), (loss_gen, ref)

    print("KERNEL_OK")
</pallas_src>

<mosaic_0001>
module attributes {stable_mosaic.version = 11 : i64} {
  func.func @_focal_loss_kernel(%arg0: i32, %arg1: memref<8x128xf32, #tpu.memory_space<vmem>>, %arg2: memref<8x128xf32, #tpu.memory_space<vmem>>, %arg3: memref<8x128xf32, #tpu.memory_space<vmem>>, %arg4: memref<8x128xf32, #tpu.memory_space<vmem>>) attributes {dimension_semantics = [#tpu.dimension_semantics<parallel>], iteration_bounds = array<i64: 2>, scalar_prefetch = 0 : i64, scratch_operands = 0 : i64, tpu.core_type = #tpu.core_type<tc>, window_params = [{transform_indices = @transform_0, window_bounds = array<i64: 8, 128>}, {transform_indices = @transform_1, window_bounds = array<i64: 8, 128>}, {transform_indices = @transform_2, window_bounds = array<i64: 8, 128>}, {transform_indices = @transform_3, window_bounds = array<i64: 8, 128>}]} {
    %c0 = arith.constant 0 : index
    %c0_0 = arith.constant 0 : index
    %0 = vector.load %arg1[%c0, %c0_0] : memref<8x128xf32, #tpu.memory_space<vmem>>, vector<8x128xf32>
    %c0_1 = arith.constant 0 : index
    %c0_2 = arith.constant 0 : index
    %1 = vector.load %arg2[%c0_1, %c0_2] : memref<8x128xf32, #tpu.memory_space<vmem>>, vector<8x128xf32>
    %2 = arith.negf %0 : vector<8x128xf32>
    %3 = math.exp %2 : vector<8x128xf32>
    %cst = arith.constant 1.000000e+00 : f32
    %4 = vector.broadcast %cst : f32 to vector<8x128xf32>
    %5 = arith.addf %4, %3 : vector<8x128xf32>
    %6 = arith.divf %4, %5 : vector<8x128xf32>
    %7 = arith.subf %6, %1 : vector<8x128xf32>
    %cst_3 = arith.constant 5.000000e-01 : f32
    %8 = vector.broadcast %cst_3 : f32 to vector<8x128xf32>
    %9 = arith.cmpf ogt, %1, %8 : vector<8x128xf32>
    %cst_4 = arith.constant 2.500000e-01 : f32
    %cst_5 = arith.constant 7.500000e-01 : f32
    %10 = vector.broadcast %cst_4 : f32 to vector<8x128xf32>
    %11 = vector.broadcast %cst_5 : f32 to vector<8x128xf32>
    %12 = arith.select %9, %10, %11 : vector<8x128xi1>, vector<8x128xf32>
    %cst_6 = arith.constant 1.000000e+00 : f32
    %13 = vector.broadcast %cst_6 : f32 to vector<8x128xf32>
    %14 = arith.subf %13, %6 : vector<8x128xf32>
    %15 = arith.select %9, %6, %14 : vector<8x128xi1>, vector<8x128xf32>
    %16 = arith.mulf %7, %7 : vector<8x128xf32>
    %17 = arith.mulf %16, %12 : vector<8x128xf32>
    %cst_7 = arith.constant 9.99999971E-10 : f32
    %18 = vector.broadcast %cst_7 : f32 to vector<8x128xf32>
    %19 = arith.addf %15, %18 : vector<8x128xf32>
    %20 = math.log %19 : vector<8x128xf32>
    %cst_8 = arith.constant 0.000000e+00 : f32
    %21 = vector.broadcast %cst_8 : f32 to vector<8x128xf32>
    %22 = arith.subf %21, %20 : vector<8x128xf32>
    %23 = arith.mulf %17, %22 : vector<8x128xf32>
    %24 = vector.shape_cast %23 : vector<8x128xf32> to vector<1x8x128xf32>
    %cst_9 = arith.constant dense<0.000000e+00> : vector<8x128xf32>
    %25 = vector.multi_reduction <add>, %24, %cst_9 [0] : vector<1x8x128xf32> to vector<8x128xf32>
    %c0_10 = arith.constant 0 : index
    %c0_11 = arith.constant 0 : index
    %26 = vector.load %arg3[%c0_10, %c0_11] : memref<8x128xf32, #tpu.memory_space<vmem>>, vector<8x128xf32>
    tpu.vector_store %arg3[%c0_10, %c0_11], %25 {strides = array<i32>} : memref<8x128xf32, #tpu.memory_space<vmem>>, vector<8x128xf32>,
    %27 = vector.shape_cast %1 : vector<8x128xf32> to vector<1x8x128xf32>
    %cst_12 = arith.constant dense<0.000000e+00> : vector<8x128xf32>
    %28 = vector.multi_reduction <add>, %27, %cst_12 [0] : vector<1x8x128xf32> to vector<8x128xf32>
    %c0_13 = arith.constant 0 : index
    %c0_14 = arith.constant 0 : index
    %29 = vector.load %arg4[%c0_13, %c0_14] : memref<8x128xf32, #tpu.memory_space<vmem>>, vector<8x128xf32>
    tpu.vector_store %arg4[%c0_13, %c0_14], %28 {strides = array<i32>} : memref<8x128xf32, #tpu.memory_space<vmem>>, vector<8x128xf32>,
    return
  }
  func.func @transform_0(%arg0: i32) -> (i32, i32) {
    %c0_i32 = arith.constant 0 : i32
    %c0_i32_0 = arith.constant 0 : i32
    return %arg0, %c0_i32 : i32, i32
  }
  func.func @transform_1(%arg0: i32) -> (i32, i32) {
    %c0_i32 = arith.constant 0 : i32
    %c0_i32_0 = arith.constant 0 : i32
    return %arg0, %c0_i32 : i32, i32
  }
  func.func @transform_2(%arg0: i32) -> (i32, i32) {
    %c0_i32 = arith.constant 0 : i32
    %c0_i32_0 = arith.constant 0 : i32
    return %arg0, %c0_i32 : i32, i32
  }
  func.func @transform_3(%arg0: i32) -> (i32, i32) {
    %c0_i32 = arith.constant 0 : i32
    %c0_i32_0 = arith.constant 0 : i32
    return %arg0, %c0_i32 : i32, i32
  }
}

</mosaic_0001>

<bundles_post_ra>
// kernel: focal_loss.1
= control target key start
LH: loop header
LB: loop body
LE: loop exit
PB: predicated region body
PF: predicated region fallthrough
CT: control target
= control target key end

     0   :  { %s370_s12 = smov 0   ;;  %s393_s0 = inlined_call_operand.vmem [shape: f32[16,128], index: 0, kind: input, shape index: {}]   ;;  %s394_s1 = inlined_call_operand.vmem [shape: f32[16,128], index: 1, kind: input, shape index: {}]   ;;  %s395_s2 = inlined_call_operand.vmem [shape: f32[16,128], index: 2, kind: output, shape index: {0}]   ;;  %s396_s3 = inlined_call_operand.vmem [shape: f32[16,128], index: 3, kind: output, shape index: {1}]  }
   0x1 LB: > { %s314_s13 = sadd.s32 4294967295, %s347_s12   ;;  %p318_p0 = scmp.ge.s32.totalorder %s347_s12, 1  ;;  %s347_s12 = sphi %s370_s12, %s14_s12  }
   0x2   : > { %p148_p1 = scmp.lt.s32.totalorder %s347_s12, 3 }
   0x4   : > { %p149_p2 = pnand %p318_p0, %p148_p1 }
   0x5   : > { %p178_p3 = scmp.lt.s32.totalorder (!%p149_p2), %s314_s13, 1 }
   0x6   : > { %152 = sbr.rel (%p149_p2) target bundleno = 73 (0x49), region = 28 }
   0xb   : > { %s398_s13 = smov (!%p178_p3, %s314_s13), 1  ;;  %v349_v11 = vmov 0.75  }
   0xc   : > { %s319_s14 = sshll.u32 %s398_s13, 3 }
   0xd   : > { %s181_s17 = scalar_lea.vmem %s393_s0, %s319_s14  ;;  %s185_s20 = scalar_lea.vmem %s394_s1, %s319_s14 }
   0xe   : > { %v194_v0 = vld [vmem:[%s181_s17] sm:$0xff]  ;;  %s193_s23 = scalar_lea.vmem %s396_s3, %s319_s14  ;;  %s189_s26 = scalar_lea.vmem %s395_s2, %s319_s14 }
   0xf   : > { %v195_v1 = vld [vmem:[%s185_s20] sm:$0xff]  ;;  %v323_v2 = vmul.f32 -1.442695, %v194_v0 }
  0x10   : > { %217 = vst [vmem:[%s193_s23] sm:$0xff] %v195_v1  ;;  %vm203_vm0 = vcmp.gt.f32.partialorder %v195_v1, 0.5 }
  0x11   : > { %335 = vpow2.f32 %v323_v2  ;;  %v204_v12 = vsel %vm203_vm0, 0.25, %v349_v11 }
  0x1e   : > { %v336_v3 = vpop.eup %335 }
  0x1f   : > { %v199_v4 = vadd.f32 1.0, %v336_v3 }
  0x21   : > { %337 = vrcp.f32 %v199_v4 }
  0x2e   : > { %v338_v5 = vpop.eup %337 }
  0x2f   : > { %v205_v6 = vsub.f32 1.0, %v338_v5  ;;  %v202_v9 = vsub.f32 %v338_v5, %v195_v1 }
  0x31   : > { %v206_v7 = vsel %vm203_vm0, %v338_v5, %v205_v6  ;;  %v207_v10 = vmul.f32 %v202_v9, %v202_v9 }
  0x32   : > { %v209_v8 = vadd.f32 1e-09, %v206_v7 }
  0x33   : > { %v208_v14 = vmul.f32 %v207_v10, %v204_v12 }
  0x34   : > { %339 = vlog2.f32 %v209_v8 }
  0x41   : > { %v340_v13 = vpop.eup %339 }
  0x42   : > { %v211_v15 = vmul.f32 0.6931472, %v340_v13 }
  0x44   : > { %v212_v16 = vsub.f32 0.0, %v211_v15 }
  0x46   : > { %v213_v17 = vmul.f32 %v212_v16, %v208_v14 }
  0x48   : > { %215 = vst [vmem:[%s189_s26] sm:$0xff] %v213_v17 }
  0x49 PF: > { %s14_s12 = sadd.s32 1, %s347_s12  }
  0x4a   : > { %p11_p4 = scmp.ge.s32.totalorder %s14_s12, 4  }
  0x4c   :  { %13 = sbr.rel (!%p11_p4) target bundleno = 1 (0x1), region = 73 }

</bundles_post_ra>
